<compile_context>
chip_gen: v7x
topology: tpu7x:2x2x1
jax: 0.10.0
libtpu: 0.0.40
codegen_flags: <defaults>
</compile_context>

<pallas_src>
import jax
import jax.numpy as jnp
from jax.experimental import pallas as pl
from jax.experimental.pallas import tpu as pltpu


_LANE = 128  # TPU lane width; feature dim is padded to this so stores are lane-dense.


def _tiles_for(n):
    """Padded node count + aggregation tile sizes (all multiples of 128)."""
    TM = 512
    n_pad = TM * pl.cdiv(n, TM)                  # pad rows/cols to a multiple of the row tile
    tm = TM
    if n_pad // tm < 2:                          # keep >= 2 row blocks (v7x: 2 TCs/chip)
        tm = max(128, n_pad // 2)
    tk = 1024 if n_pad % 1024 == 0 else 512      # >= 512 fills the 256-wide MXU contraction
    return n_pad, tm, tk


def _linear_scale_kernel(x_ref, wt_ref, dinv_ref, out_ref):
    # out = bf16( dinv_src * (x @ W^T) ), written into a lane-dense padded slab.
    xw = jnp.dot(x_ref[...], wt_ref[...], preferred_element_type=jnp.float32)
    out_ref[...] = (dinv_ref[...] * xw).astype(out_ref.dtype)


def _aggregate_kernel(adj_ref, xw_ref, dinv_ref, b_ref, out_ref):
    # adj_ref:  [tm, tk] bf16 tile of A_hat = A + I (small integer counts, exact in bf16)
    # xw_ref:   [tk, dp] bf16 source-scaled features (dinv_src * x @ W^T)
    # dinv_ref: [tm, 1]  f32 D^{-1/2} for destination rows
    # b_ref:    [1, dp]  f32 padded bias
    # out_ref:  [tm, dp] f32; block index is constant over k, so it stays VMEM-resident
    #           and doubles as the f32 accumulator (no scratch buffer).
    k = pl.program_id(1)

    @pl.when(k == 0)
    def _():
        out_ref[...] = jnp.zeros_like(out_ref)

    # bf16 x bf16 -> f32 accumulate: native MXU path on v5e/v6e/v7x.
    out_ref[...] += jnp.dot(adj_ref[...], xw_ref[...],
                            preferred_element_type=jnp.float32)

    @pl.when(k == pl.num_programs(1) - 1)
    def _():
        out_ref[...] = dinv_ref[...] * out_ref[...] + b_ref[...]


def gcn_conv_pallas(x, edge_index, weight, bias):
    """x: [N, dim_in] f32, edge_index: [2, E] i32 (row0=src, row1=dst),
    weight: [dim_out, dim_in] (Linear convention, applied as x @ W^T),
    bias: [dim_out] -> out: [N, dim_out] f32."""
    n, dim_in = x.shape
    dim_out = weight.shape[0]

    n_pad, tm, tk = _tiles_for(n)
    dp = _LANE * pl.cdiv(dim_out, _LANE)
    tm1 = 512  # stage-1 row tile; n_pad is always a multiple of 512

    # ---- glue (data-dependent scatter; no clean Pallas equivalent) ----------
    src, dst = edge_index[0], edge_index[1]
    self_idx = jnp.arange(n, dtype=src.dtype)
    src_all = jnp.concatenate([src, self_idx])
    dst_all = jnp.concatenate([dst, self_idx])

    # A_hat = A + I via one scatter-add straight into bf16 (no f32 round trip).
    # TODO(synk): bf16 counts are exact only for per-(dst,src) multiplicity <= 256;
    # heavier multigraphs need an int scatter + cast.
    ones_bf16 = jnp.ones(dst_all.shape, jnp.bfloat16)
    adj = jnp.zeros((n_pad, n_pad), jnp.bfloat16).at[dst_all, src_all].add(ones_bf16)

    # Degrees in O(E); padded rows get deg=1 so rsqrt stays finite.
    deg = jnp.zeros((n_pad,), jnp.float32).at[dst_all].add(1.0)
    deg = jnp.maximum(deg, 1.0)
    dinv = jax.lax.rsqrt(deg).reshape(n_pad, 1)

    # Layout work: pre-transpose W, pad feature dim / bias to 128 lanes (lane-dense stores).
    wt = jnp.zeros((dim_in, dp), jnp.float32).at[:, :dim_out].set(
        weight.T.astype(jnp.float32))
    b2 = jnp.zeros((1, dp), jnp.float32).at[0, :dim_out].set(bias.astype(jnp.float32))
    x_pad = jnp.zeros((n_pad, dim_in), jnp.float32).at[:n].set(x.astype(jnp.float32))

    # ---- stage 1: xw_scaled = bf16(dinv_src * (x @ W^T)), lane-dense [n_pad, dp] ----
    xw_scaled = pl.pallas_call(
        _linear_scale_kernel,
        out_shape=jax.ShapeDtypeStruct((n_pad, dp), jnp.bfloat16),
        grid=(n_pad // tm1,),
        in_specs=[
            pl.BlockSpec((tm1, dim_in), lambda i: (i, 0)),
            pl.BlockSpec((dim_in, dp), lambda i: (0, 0)),
            pl.BlockSpec((tm1, 1), lambda i: (i, 0)),
        ],
        out_specs=pl.BlockSpec((tm1, dp), lambda i: (i, 0)),
        compiler_params=pltpu.CompilerParams(dimension_semantics=("parallel",)),
    )(x_pad, wt, dinv)

    # ---- stage 2: out = dinv_dst * (A_hat @ xw_scaled) + b ------------------
    n_row_blocks = n_pad // tm
    cost = pl.CostEstimate(
        flops=2 * n_pad * n_pad * dp,
        transcendentals=0,
        bytes_accessed=(adj.size * 2                       # bf16 adjacency, streamed once
                        + xw_scaled.size * 2 * n_row_blocks  # bf16 xw, re-streamed per row block
                        + n_pad * dp * 4),                  # f32 output
    )
    out_pad = pl.pallas_call(
        _aggregate_kernel,
        out_shape=jax.ShapeDtypeStruct((n_pad, dp), jnp.float32),
        grid=(n_row_blocks, n_pad // tk),
        in_specs=[
            # Secondary knob if profiling shows exposed adj DMA:
            #   pl.BlockSpec((tm, tk), lambda i, k: (i, k), pipeline_mode=pl.Buffered(3))
            pl.BlockSpec((tm, tk), lambda i, k: (i, k)),   # bf16 adjacency tile
            pl.BlockSpec((tk, dp), lambda i, k: (k, 0)),   # bf16 source-scaled features
            pl.BlockSpec((tm, 1), lambda i, k: (i, 0)),    # dinv for dst rows
            pl.BlockSpec((1, dp), lambda i, k: (0, 0)),    # padded bias
        ],
        out_specs=pl.BlockSpec((tm, dp), lambda i, k: (i, 0)),
        compiler_params=pltpu.CompilerParams(
            dimension_semantics=("parallel", "arbitrary")),
        cost_estimate=cost,
    )(adj, xw_scaled, dinv, b2)

    return out_pad[:n, :dim_out]


def gcn_conv_reference(x, edge_index, weight, bias):
    n = x.shape[0]
    src, dst = edge_index[0], edge_index[1]
    adj = jnp.zeros((n, n), jnp.float32).at[dst, src].add(1.0)
    adj = adj + jnp.eye(n, dtype=jnp.float32)
    deg = adj.sum(axis=1, keepdims=True)
    dinv = 1.0 / jnp.sqrt(deg)
    a_norm = adj * dinv * dinv.T
    xw = jnp.dot(x, weight.T, precision=jax.lax.Precision.HIGHEST)
    return jnp.dot(a_norm, xw, precision=jax.lax.Precision.HIGHEST) + bias[None, :]


if __name__ == "__main__":
    key = jax.random.PRNGKey(0)
    k_x, k_e, k_w, k_b = jax.random.split(key, 4)

    # Graph consistent with the module: LayerConfig(dim_in=32, dim_out=64).
    # N=1200 pads to 1536 -> a (3 row-block x 3 k-block) grid with 512-wide tiles,
    # exercising padding, the accumulate-over-k path, and >=2 parallel row blocks.
    N, E, DIM_IN, DIM_OUT = 1200, 4800, 32, 64

    x = jax.random.normal(k_x, (N, DIM_IN), dtype=jnp.float32)
    edge_index = jax.random.randint(k_e, (2, E), 0, N, dtype=jnp.int32)

    # Glorot-ish weight init (as in pyg GeneralConvLayer), small random bias.
    limit = (6.0 / (DIM_IN + DIM_OUT)) ** 0.5
    weight = jax.random.uniform(k_w, (DIM_OUT, DIM_IN), dtype=jnp.float32,
                                minval=-limit, maxval=limit)
    bias = 0.1 * jax.random.normal(k_b, (DIM_OUT,), dtype=jnp.float32)

    out = gcn_conv_pallas(x, edge_index, weight, bias)
    out = jax.block_until_ready(out)

    ref = gcn_conv_reference(x, edge_index, weight, bias)
    assert out.shape == (N, DIM_OUT)
    # bf16 per-term precision (f32 accumulation) -> tolerance loosened accordingly.
    assert jnp.allclose(out, ref, atol=2e-2, rtol=2e-2), "mismatch vs reference"

    print("KERNEL_OK")
</pallas_src>

<mosaic_0001>
module attributes {stable_mosaic.version = 11 : i64} {
  func.func @_linear_scale_kernel(%arg0: i32, %arg1: memref<512x32xf32, #tpu.memory_space<vmem>>, %arg2: memref<32x128xf32, #tpu.memory_space<vmem>>, %arg3: memref<512x1xf32, #tpu.memory_space<vmem>>, %arg4: memref<512x128xbf16, #tpu.memory_space<vmem>>) attributes {dimension_semantics = [#tpu.dimension_semantics<parallel>], iteration_bounds = array<i64: 3>, scalar_prefetch = 0 : i64, scratch_operands = 0 : i64, tpu.core_type = #tpu.core_type<tc>, window_params = [{transform_indices = @transform_0, window_bounds = array<i64: 512, 32>}, {pipeline_mode = #tpu.pipeline_mode<synchronous>, transform_indices = @transform_1, window_bounds = array<i64: 32, 128>}, {transform_indices = @transform_2, window_bounds = array<i64: 512, 1>}, {transform_indices = @transform_3, window_bounds = array<i64: 512, 128>}]} {
    %c0 = arith.constant 0 : index
    %c0_0 = arith.constant 0 : index
    %0 = vector.load %arg1[%c0, %c0_0] : memref<512x32xf32, #tpu.memory_space<vmem>>, vector<512x32xf32>
    %c0_1 = arith.constant 0 : index
    %c0_2 = arith.constant 0 : index
    %1 = vector.load %arg2[%c0_1, %c0_2] : memref<32x128xf32, #tpu.memory_space<vmem>>, vector<32x128xf32>
    %cst = arith.constant dense<0.000000e+00> : vector<512x128xf32>
    %2 = tpu.matmul %0, %1, %cst {dimension_numbers = #tpu.dot_dimension_numbers<[1], [0], [0], [1], [0, 0, 1, 1], [], []>} : vector<512x32xf32>, vector<32x128xf32>, vector<512x128xf32> -> vector<512x128xf32>
    %c0_3 = arith.constant 0 : index
    %c0_4 = arith.constant 0 : index
    %3 = vector.load %arg3[%c0_3, %c0_4] : memref<512x1xf32, #tpu.memory_space<vmem>>, vector<512x1xf32>
    %4 = vector.broadcast %3 : vector<512x1xf32> to vector<512x128xf32>
    %5 = arith.mulf %4, %2 : vector<512x128xf32>
    %6 = arith.truncf %5 : vector<512x128xf32> to vector<512x128xbf16>
    %c0_5 = arith.constant 0 : index
    %c0_6 = arith.constant 0 : index
    %7 = vector.load %arg4[%c0_5, %c0_6] : memref<512x128xbf16, #tpu.memory_space<vmem>>, vector<512x128xbf16>
    tpu.vector_store %arg4[%c0_5, %c0_6], %6 {strides = array<i32>} : memref<512x128xbf16, #tpu.memory_space<vmem>>, vector<512x128xbf16>,
    return
  }
  func.func @transform_0(%arg0: i32) -> (i32, i32) {
    %c0_i32 = arith.constant 0 : i32
    %c0_i32_0 = arith.constant 0 : i32
    return %arg0, %c0_i32 : i32, i32
  }
  func.func @transform_1(%arg0: i32) -> (i32, i32) {
    %c0_i32 = arith.constant 0 : i32
    %c0_i32_0 = arith.constant 0 : i32
    %c0_i32_1 = arith.constant 0 : i32
    return %c0_i32, %c0_i32_0 : i32, i32
  }
  func.func @transform_2(%arg0: i32) -> (i32, i32) {
    %c0_i32 = arith.constant 0 : i32
    %c0_i32_0 = arith.constant 0 : i32
    return %arg0, %c0_i32 : i32, i32
  }
  func.func @transform_3(%arg0: i32) -> (i32, i32) {
    %c0_i32 = arith.constant 0 : i32
    %c0_i32_0 = arith.constant 0 : i32
    return %arg0, %c0_i32 : i32, i32
  }
}

</mosaic_0001>

<bundles_post_ra>
// kernel: tpu_custom_call.1
= control target key start
LH: loop header
LB: loop body
LE: loop exit
PB: predicated region body
PF: predicated region fallthrough
CT: control target
= control target key end

     0   :  { %8 = vsyncpa [#allocation3], 0  ;;  %s2894_s0 = inlined_call_operand.vmem [shape: f32[1536,32], index: 0, kind: input, shape index: {}]   ;;  %s2895_s1 = inlined_call_operand.vmem [shape: f32[32,128], index: 1, kind: input, shape index: {}]   ;;  %s2896_s2 = inlined_call_operand.vmem [shape: f32[1536,1], index: 2, kind: input, shape index: {}]   ;;  %s2897_s3 = inlined_call_operand.hbm [shape: bf16[1536,128], index: 3, kind: output, shape index: {}]  }
   0x1   :  { %10 = vsyncpa [#allocation3 + $0x1], 0  ;;  %s2410_s12 = smov 0   ;;  %s2412_s13 = smov 0  }
   0x2   :  { %s2414_s14 = smov 0   ;;  %s2416_s15 = smov 0  }
   0x3 LB: > { %s2431_s16 = sadd.s32 4294967295, %s2384_s15   ;;  %s1696_s17 = sadd.s32 4294967294, %s2384_s15   ;;  %s2384_s15 = sphi %s2416_s15, %s2903_s15   ;;  %s2380_s14 = sphi %s2414_s14, %s2902_s14   ;;  %s2376_s13 = sphi %s2412_s13, %s2901_s13   ;;  %s2372_s12 = sphi %s2410_s12, %s2900_s12  }
   0x4   : > { %s2435_s18 = sadd.s32 1, %s2384_s15   ;;  %s96_s19 = sadd.s32 1, %s2380_s14 }
   0x5   : > { %s93_s20 = ssub.s32 %s2384_s15, %s2435_s18  ;;  %p106_p0 = scmp.ne.s32.totalorder %s2380_s14, %s2376_s13 }
   0x6   : > { %p94_p1 = scmp.eq.s32.totalorder %s93_s20, 0  ;;  %p107_p2 = scmp.eq.s32.totalorder %s2431_s16, 2 }
   0x7   : > { %p112_p3 = scmp.ne.s32.totalorder %s2376_s13, %s2372_s12  ;;  %p113_p4 = scmp.eq.s32.totalorder %s1696_s17, 2 }
   0x8   : > { %s2446_s21 = scalar_select %p94_p1, %s2380_s14, %s96_s19  }
   0x9   : > { %p2448_p5 = por %p107_p2, %p106_p0  ;;  %p2452_p6 = por %p113_p4, %p112_p3 }
   0xa   : > { %p1699_p7 = scmp.ge.s32.totalorder %s2384_s15, 1  ;;  %p152_p8 = scmp.lt.s32.totalorder %s2384_s15, 4 }
   0xc   : > { %p153_p9 = pnand %p1699_p7, %p152_p8 }
   0xd   : > { %v258_v0 = vld [vmem:[%s2895_s1] sm:$0xff] (!%p153_p9)  ;;  %v259_v1 = vld [vmem:[%s2895_s1 + $0x8] sm:$0xff] (!%p153_p9)  ;;  %v260_v2 = vld [vmem:[%s2895_s1 + $0x10] sm:$0xff] (!%p153_p9)  ;;  %s1701_s30 = sshll.u32 (!%p153_p9), %s2431_s16, 6  ;;  %v2386_v4 = vmov (!%p153_p9), 0   ;;  %vm262_vm0 = vcmask (!%p153_p9), 261120  }
   0xe   : > { %156 = sbr.rel (%p153_p9) target bundleno = 320 (0x140), region = 32  ;;  %v2266_v3 = vpack.c.bf16 (!%p153_p9), %v259_v1, %v258_v0  ;;  %2321 = vset.pattern.permute.xlu1 (!%p153_p9), %v2386_v4  ;;  %2320 = vset.pattern.permute.xlu0 (!%p153_p9), %v2386_v4  ;;  %v261_v5 = vld [vmem:[%s2895_s1 + $0x18] sm:$0xff] (!%p153_p9)  ;;  %p182_p10 = scmp.lt.s32.totalorder (!%p153_p9), %s1701_s30, 191 }
   0xf   : > { %v2270_v6 = vpack.c.bf16 (!%p153_p9), %v261_v5, %v260_v2  ;;  %s178_s19 = sand.u32 (!%p153_p9), 1, %s2376_s13   ;;  %s1902_s25 = sshll.u32 (!%p153_p9), %s2431_s16, 12 }
  0x10   : > { %2267 = vmatprep.subr.bf16.mxu0 (!%p153_p9), %v2266_v3  ;;  %2274 = vmatprep.subr.bf16.mxu1 (!%p153_p9), %v2266_v3  ;;  %s1700_s20 = sshll.u32 (!%p153_p9), %s178_s19, 8  ;;  %s2845_s29 = scalar_lea.hbm (!%p153_p9), %s2897_s3, %s1902_s25 }
  0x11   : > { %2269 = vmatpush3.bf16.msra.mxu0 (!%p153_p9), %v2266_v3  ;;  %2276 = vmatpush3.bf16.msra.mxu1 (!%p153_p9), %v2266_v3  ;;  %s2746_s24 = scalar_lea.vmem (!%p153_p9), [#allocation2], %s1700_s20  ;;  %s2853_s16 = scalar_lea.sflag (!%p153_p9), [#allocation3], %s178_s19 }
  0x12   : > { %2271 = vmatprep.subr.bf16.mxu0 (!%p153_p9), %v2270_v6  ;;  %2275 = vmatprep.subr.bf16.mxu1 (!%p153_p9), %v2270_v6  ;;  %s1622_s26 = sshll.u32 (!%p153_p9), %s2746_s24, 4  ;;  %s2387_s4 = smov (!%p153_p9), [#allocation2]   ;;  %s2847_s26 = int_to_ptr.vmem [resolvable:$true] %s1622_s26 }
  0x13   : > { %s2326_s5 = sshll.u32 (!%p153_p9), %s2387_s4, 4  ;;  %s2327_s5 = int_to_ptr.vmem [resolvable:$false] %s2326_s5 }
  0x14   : > { %p2329_p0 = scmp.lt.s32.totalorder (!%p153_p9), %s2847_s26, %s2327_s5 }
  0x15   : > { %s2905_s30 = smov (!%p182_p10, %s1701_s30), 191  ;;  %2273 = vmatpush3.bf16.msra.mxu0 %v2270_v6  ;;  %2277 = vmatpush3.bf16.msra.mxu1 %v2270_v6 }
  0x16   : > { %s1702_s6 = sshll.u32 %s2905_s30, 3  ;;  %s2322_s30 = scalar_lea.vmem %s2847_s26, 4096 }
  0x17   : > { %s2474_s9 = scalar_lea.vmem %s2896_s2, %s1702_s6  ;;  %s2479_s17 = scalar_lea.vmem %s2894_s0, %s1702_s6 }
  0x18   : > { %v842_v7 = vld [vmem:[%s2474_s9 + $0x10] sm:$0xff]  ;;  %v840_v8 = vld [vmem:[%s2474_s9] sm:$0xff]  ;;  %v195_v11 = vld [vmem:[%s2479_s17 + $0x8] sm:$0xff]  ;;  %p2323_p11 = scmp.ne.s32.totalorder %s2847_s26, %s2322_s30  ;;  %s2328_s6 = scalar_lea.vmem %s2327_s5, 8192 }
  0x19   : > { %v194_v9 = vld [vmem:[%s2479_s17] sm:$0xff]  ;;  %v227_v12 = vld [vmem:[%s2479_s17 + $0x108] sm:$0xff]  ;;  %916 = vperm.xlu1 %2321, %v842_v7   ;;  %906 = vperm.xlu0 %2320, %v840_v8   ;;  %v196_v13 = vld [vmem:[%s2479_s17 + $0x10] sm:$0xff]  ;;  %p2330_p1 = scmp.lt.s32.totalorder %s2328_s6, %s2322_s30 }
  0x1a   : > { %v226_v10 = vld [vmem:[%s2479_s17 + $0x100] sm:$0xff]  ;;  %2170 = vmatprep.mubr.msk.f32.mxu0 %vm262_vm0, %v194_v9  ;;  %v843_v14 = vld [vmem:[%s2474_s9 + $0x18] sm:$0xff]  ;;  %v841_v15 = vld [vmem:[%s2474_s9 + $0x8] sm:$0xff]  ;;  %p2324_p12 = pnand %p2323_p11, %p2448_p5 }
  0x1b   : > { %2218 = vmatprep.mubr.msk.f32.mxu1 %vm262_vm0, %v226_v10  ;;  %v228_v16 = vld [vmem:[%s2479_s17 + $0x110] sm:$0xff]  ;;  %2171 = vmatmul.mubr.msk.f32.vlgmr.msra.gmra.mrb[0].mxu0 %vm262_vm0, %v195_v11  ;;  %v197_v17 = vld [vmem:[%s2479_s17 + $0x18] sm:$0xff]  ;;  %v198_v19 = vld [vmem:[%s2479_s17 + $0x20] sm:$0xff]  ;;  %p2331_p2 = por %p2330_p1, %p2329_p0 }
  0x1c   : > { %2219 = vmatmul.mubr.msk.f32.vlgmr.msra.gmra.mrb[0].mxu1 %vm262_vm0, %v227_v12  ;;  %2173 = vmatprep.mubr.msk.f32.mxu0 %vm262_vm0, %v196_v13  ;;  %v229_v18 = vld [vmem:[%s2479_s17 + $0x118] sm:$0xff]  ;;  %v230_v20 = vld [vmem:[%s2479_s17 + $0x120] sm:$0xff]  ;;  %v845_v21 = vld [vmem:[%s2474_s9 + $0x28] sm:$0xff]  ;;  %p2325_p13 = pneg %p2324_p12 }
  0x1d   : > { %2221 = vmatprep.mubr.msk.f32.mxu1 %vm262_vm0, %v228_v16  ;;  %921 = vperm.xlu1 %2321, %v843_v14   ;;  %v844_v22 = vld [vmem:[%s2474_s9 + $0x20] sm:$0xff]  ;;  %v199_v23 = vld [vmem:[%s2479_s17 + $0x28] sm:$0xff]  ;;  %v200_v25 = vld [vmem:[%s2479_s17 + $0x30] sm:$0xff] }
  0x1e   : > { %911 = vperm.xlu0 %2320, %v841_v15   ;;  %v231_v24 = vld [vmem:[%s2479_s17 + $0x128] sm:$0xff]  ;;  %v232_v26 = vld [vmem:[%s2479_s17 + $0x130] sm:$0xff]  ;;  %v847_v27 = vld [vmem:[%s2474_s9 + $0x38] sm:$0xff]  ;;  %p2332_p3 = pnand %p2331_p2, %p2325_p13 }
  0x1f   : > { %2174 = vmatmul.mubr.msk.f32.gmra.mrb[2].mxu0 %vm262_vm0, %v197_v17  ;;  %v846_v28 = vld [vmem:[%s2474_s9 + $0x30] sm:$0xff]  ;;  %v201_v29 = vld [vmem:[%s2479_s17 + $0x38] sm:$0xff]  ;;  %v202_v31 = vld [vmem:[%s2479_s17 + $0x40] sm:$0xff] }
  0x20   : > { %2222 = vmatmul.mubr.msk.f32.gmra.mrb[2].mxu1 %vm262_vm0, %v229_v18  ;;  %2176 = vmatprep.mubr.msk.f32.mxu0 %vm262_vm0, %v198_v19  ;;  %v233_v30 = vld [vmem:[%s2479_s17 + $0x138] sm:$0xff]  ;;  %v234_v32 = vld [vmem:[%s2479_s17 + $0x140] sm:$0xff]  ;;  %v849_v33 = vld [vmem:[%s2474_s9 + $0x48] sm:$0xff] }
  0x21   : > { %2224 = vmatprep.mubr.msk.f32.mxu1 %vm262_vm0, %v230_v20  ;;  %931 = vperm.xlu1 %2321, %v845_v21   ;;  %v848_v34 = vld [vmem:[%s2474_s9 + $0x40] sm:$0xff]  ;;  %v203_v35 = vld [vmem:[%s2479_s17 + $0x48] sm:$0xff]  ;;  %v204_v37 = vld [vmem:[%s2479_s17 + $0x50] sm:$0xff] }
  0x22   : > { %926 = vperm.xlu0 %2320, %v844_v22   ;;  %v235_v36 = vld [vmem:[%s2479_s17 + $0x148] sm:$0xff]  ;;  %v236_v38 = vld [vmem:[%s2479_s17 + $0x150] sm:$0xff]  ;;  %v851_v39 = vld [vmem:[%s2474_s9 + $0x58] sm:$0xff] }
  0x23   : > { %2177 = vmatmul.mubr.msk.f32.gmra.mrb[4].mxu0 %vm262_vm0, %v199_v23  ;;  %v850_v40 = vld [vmem:[%s2474_s9 + $0x50] sm:$0xff]  ;;  %v205_v41 = vld [vmem:[%s2479_s17 + $0x58] sm:$0xff]  ;;  %v206_v43 = vld [vmem:[%s2479_s17 + $0x60] sm:$0xff] }
  0x24   : > { %2225 = vmatmul.mubr.msk.f32.gmra.mrb[4].mxu1 %vm262_vm0, %v231_v24  ;;  %2179 = vmatprep.mubr.msk.f32.mxu0 %vm262_vm0, %v200_v25  ;;  %v237_v42 = vld [vmem:[%s2479_s17 + $0x158] sm:$0xff]  ;;  %v238_v44 = vld [vmem:[%s2479_s17 + $0x160] sm:$0xff]  ;;  %v853_v45 = vld [vmem:[%s2474_s9 + $0x68] sm:$0xff] }
  0x25   : > { %2227 = vmatprep.mubr.msk.f32.mxu1 %vm262_vm0, %v232_v26  ;;  %941 = vperm.xlu1 %2321, %v847_v27   ;;  %v852_v46 = vld [vmem:[%s2474_s9 + $0x60] sm:$0xff]  ;;  %v207_v47 = vld [vmem:[%s2479_s17 + $0x68] sm:$0xff]  ;;  %v208_v49 = vld [vmem:[%s2479_s17 + $0x70] sm:$0xff] }
  0x26   : > { %936 = vperm.xlu0 %2320, %v846_v28   ;;  %v239_v48 = vld [vmem:[%s2479_s17 + $0x168] sm:$0xff]  ;;  %v240_v50 = vld [vmem:[%s2479_s17 + $0x170] sm:$0xff]  ;;  %v855_v51 = vld [vmem:[%s2474_s9 + $0x78] sm:$0xff] }
  0x27   : > { %2180 = vmatmul.mubr.msk.f32.gmra.mrb[6].mxu0 %vm262_vm0, %v201_v29  ;;  %v854_v52 = vld [vmem:[%s2474_s9 + $0x70] sm:$0xff]  ;;  %v209_v53 = vld [vmem:[%s2479_s17 + $0x78] sm:$0xff]  ;;  %v210_v55 = vld [vmem:[%s2479_s17 + $0x80] sm:$0xff] }
  0x28   : > { %2228 = vmatmul.mubr.msk.f32.gmra.mrb[6].mxu1 %vm262_vm0, %v233_v30  ;;  %2182 = vmatprep.mubr.msk.f32.mxu0 %vm262_vm0, %v202_v31  ;;  %v241_v54 = vld [vmem:[%s2479_s17 + $0x178] sm:$0xff]  ;;  %v242_v56 = vld [vmem:[%s2479_s17 + $0x180] sm:$0xff]  ;;  %v857_v57 = vld [vmem:[%s2474_s9 + $0x88] sm:$0xff] }
  0x29   : > { %2230 = vmatprep.mubr.msk.f32.mxu1 %vm262_vm0, %v234_v32  ;;  %951 = vperm.xlu1 %2321, %v849_v33   ;;  %v856_v58 = vld [vmem:[%s2474_s9 + $0x80] sm:$0xff]  ;;  %v211_v59 = vld [vmem:[%s2479_s17 + $0x88] sm:$0xff]  ;;  %v212_v61 = vld [vmem:[%s2479_s17 + $0x90] sm:$0xff] }
  0x2a   : > { %946 = vperm.xlu0 %2320, %v848_v34   ;;  %v243_v60 = vld [vmem:[%s2479_s17 + $0x188] sm:$0xff]  ;;  %v244_v62 = vld [vmem:[%s2479_s17 + $0x190] sm:$0xff]  ;;  %v859_v63 = vld [vmem:[%s2474_s9 + $0x98] sm:$0xff] }
  0x2b   : > { %2183 = vmatmul.mubr.msk.f32.gmra.mrb[8].mxu0 %vm262_vm0, %v203_v35  ;;  %v858_v0 = vld [vmem:[%s2474_s9 + $0x90] sm:$0xff]  ;;  %v213_v1 = vld [vmem:[%s2479_s17 + $0x98] sm:$0xff]  ;;  %v214_v3 = vld [vmem:[%s2479_s17 + $0xa0] sm:$0xff] }
  0x2c   : > { %2231 = vmatmul.mubr.msk.f32.gmra.mrb[8].mxu1 %vm262_vm0, %v235_v36  ;;  %2185 = vmatprep.mubr.msk.f32.mxu0 %vm262_vm0, %v204_v37  ;;  %v245_v2 = vld [vmem:[%s2479_s17 + $0x198] sm:$0xff]  ;;  %v246_v4 = vld [vmem:[%s2479_s17 + $0x1a0] sm:$0xff]  ;;  %v861_v5 = vld [vmem:[%s2474_s9 + $0xa8] sm:$0xff] }
  0x2d   : > { %2233 = vmatprep.mubr.msk.f32.mxu1 %vm262_vm0, %v236_v38  ;;  %961 = vperm.xlu1 %2321, %v851_v39   ;;  %v860_v6 = vld [vmem:[%s2474_s9 + $0xa0] sm:$0xff]  ;;  %v215_v7 = vld [vmem:[%s2479_s17 + $0xa8] sm:$0xff]  ;;  %v216_v9 = vld [vmem:[%s2479_s17 + $0xb0] sm:$0xff] }
  0x2e   : > { %956 = vperm.xlu0 %2320, %v850_v40   ;;  %v247_v8 = vld [vmem:[%s2479_s17 + $0x1a8] sm:$0xff]  ;;  %v248_v10 = vld [vmem:[%s2479_s17 + $0x1b0] sm:$0xff]  ;;  %v863_v11 = vld [vmem:[%s2474_s9 + $0xb8] sm:$0xff] }
  0x2f   : > { %2186 = vmatmul.mubr.msk.f32.gmra.mrb[10].mxu0 %vm262_vm0, %v205_v41  ;;  %v862_v12 = vld [vmem:[%s2474_s9 + $0xb0] sm:$0xff]  ;;  %v217_v13 = vld [vmem:[%s2479_s17 + $0xb8] sm:$0xff]  ;;  %v218_v15 = vld [vmem:[%s2479_s17 + $0xc0] sm:$0xff] }
  0x30   : > { %2234 = vmatmul.mubr.msk.f32.gmra.mrb[10].mxu1 %vm262_vm0, %v237_v42  ;;  %2188 = vmatprep.mubr.msk.f32.mxu0 %vm262_vm0, %v206_v43  ;;  %v249_v14 = vld [vmem:[%s2479_s17 + $0x1b8] sm:$0xff]  ;;  %v250_v16 = vld [vmem:[%s2479_s17 + $0x1c0] sm:$0xff]  ;;  %v865_v17 = vld [vmem:[%s2474_s9 + $0xc8] sm:$0xff] }
  0x31   : > { %2236 = vmatprep.mubr.msk.f32.mxu1 %vm262_vm0, %v238_v44  ;;  %971 = vperm.xlu1 %2321, %v853_v45   ;;  %v864_v18 = vld [vmem:[%s2474_s9 + $0xc0] sm:$0xff]  ;;  %v219_v19 = vld [vmem:[%s2479_s17 + $0xc8] sm:$0xff]  ;;  %v220_v21 = vld [vmem:[%s2479_s17 + $0xd0] sm:$0xff] }
  0x32   : > { %966 = vperm.xlu0 %2320, %v852_v46   ;;  %v251_v20 = vld [vmem:[%s2479_s17 + $0x1c8] sm:$0xff]  ;;  %v252_v22 = vld [vmem:[%s2479_s17 + $0x1d0] sm:$0xff]  ;;  %v867_v23 = vld [vmem:[%s2474_s9 + $0xd8] sm:$0xff] }
  0x33   : > { %2189 = vmatmul.mubr.msk.f32.gmra.mrb[12].mxu0 %vm262_vm0, %v207_v47  ;;  %v866_v24 = vld [vmem:[%s2474_s9 + $0xd0] sm:$0xff]  ;;  %v221_v25 = vld [vmem:[%s2479_s17 + $0xd8] sm:$0xff]  ;;  %v222_v27 = vld [vmem:[%s2479_s17 + $0xe0] sm:$0xff] }
  0x34   : > { %2237 = vmatmul.mubr.msk.f32.gmra.mrb[12].mxu1 %vm262_vm0, %v239_v48  ;;  %2191 = vmatprep.mubr.msk.f32.mxu0 %vm262_vm0, %v208_v49  ;;  %v253_v26 = vld [vmem:[%s2479_s17 + $0x1d8] sm:$0xff]  ;;  %v254_v28 = vld [vmem:[%s2479_s17 + $0x1e0] sm:$0xff]  ;;  %v869_v29 = vld [vmem:[%s2474_s9 + $0xe8] sm:$0xff] }
  0x35   : > { %2239 = vmatprep.mubr.msk.f32.mxu1 %vm262_vm0, %v240_v50  ;;  %981 = vperm.xlu1 %2321, %v855_v51   ;;  %v868_v30 = vld [vmem:[%s2474_s9 + $0xe0] sm:$0xff]  ;;  %v223_v31 = vld [vmem:[%s2479_s17 + $0xe8] sm:$0xff]  ;;  %v224_v33 = vld [vmem:[%s2479_s17 + $0xf0] sm:$0xff] }
  0x36   : > { %976 = vperm.xlu0 %2320, %v854_v52   ;;  %v255_v32 = vld [vmem:[%s2479_s17 + $0x1e8] sm:$0xff]  ;;  %v256_v34 = vld [vmem:[%s2479_s17 + $0x1f0] sm:$0xff]  ;;  %v871_v35 = vld [vmem:[%s2474_s9 + $0xf8] sm:$0xff] }
  0x37   : > { %2192 = vmatmul.mubr.msk.f32.gmra.mrb[14].mxu0 %vm262_vm0, %v209_v53  ;;  %v870_v36 = vld [vmem:[%s2474_s9 + $0xf0] sm:$0xff]  ;;  %v225_v37 = vld [vmem:[%s2479_s17 + $0xf8] sm:$0xff]  ;;  %v873_v39 = vld [vmem:[%s2474_s9 + $0x108] sm:$0xff] }
  0x38   : > { %2240 = vmatmul.mubr.msk.f32.gmra.mrb[14].mxu1 %vm262_vm0, %v241_v54  ;;  %2194 = vmatprep.mubr.msk.f32.mxu0 %vm262_vm0, %v210_v55  ;;  %v257_v38 = vld [vmem:[%s2479_s17 + $0x1f8] sm:$0xff]  ;;  %v872_v40 = vld [vmem:[%s2474_s9 + $0x100] sm:$0xff]  ;;  %v874_v42 = vld [vmem:[%s2474_s9 + $0x110] sm:$0xff] }
  0x39   : > { %2242 = vmatprep.mubr.msk.f32.mxu1 %vm262_vm0, %v242_v56  ;;  %991 = vperm.xlu1 %2321, %v857_v57   ;;  %v875_v41 = vld [vmem:[%s2474_s9 + $0x118] sm:$0xff]  ;;  %v877_v43 = vld [vmem:[%s2474_s9 + $0x128] sm:$0xff]  ;;  %v876_v44 = vld [vmem:[%s2474_s9 + $0x120] sm:$0xff] }
  0x3a   : > { %986 = vperm.xlu0 %2320, %v856_v58   ;;  %v879_v45 = vld [vmem:[%s2474_s9 + $0x138] sm:$0xff]  ;;  %v878_v46 = vld [vmem:[%s2474_s9 + $0x130] sm:$0xff]  ;;  %v881_v47 = vld [vmem:[%s2474_s9 + $0x148] sm:$0xff] }
  0x3b   : > { %2195 = vmatmul.mubr.msk.f32.gmra.mrb[16].mxu0 %vm262_vm0, %v211_v59  ;;  %v880_v48 = vld [vmem:[%s2474_s9 + $0x140] sm:$0xff]  ;;  %v883_v49 = vld [vmem:[%s2474_s9 + $0x158] sm:$0xff]  ;;  %v882_v50 = vld [vmem:[%s2474_s9 + $0x150] sm:$0xff] }
  0x3c   : > { %2243 = vmatmul.mubr.msk.f32.gmra.mrb[16].mxu1 %vm262_vm0, %v243_v60  ;;  %2197 = vmatprep.mubr.msk.f32.mxu0 %vm262_vm0, %v212_v61  ;;  %v885_v51 = vld [vmem:[%s2474_s9 + $0x168] sm:$0xff]  ;;  %v884_v52 = vld [vmem:[%s2474_s9 + $0x160] sm:$0xff]  ;;  %v887_v53 = vld [vmem:[%s2474_s9 + $0x178] sm:$0xff] }
  0x3d   : > { %2245 = vmatprep.mubr.msk.f32.mxu1 %vm262_vm0, %v244_v62  ;;  %1001 = vperm.xlu1 %2321, %v859_v63   ;;  %v886_v54 = vld [vmem:[%s2474_s9 + $0x170] sm:$0xff]  ;;  %v889_v55 = vld [vmem:[%s2474_s9 + $0x188] sm:$0xff]  ;;  %v888_v56 = vld [vmem:[%s2474_s9 + $0x180] sm:$0xff] }
  0x3e   : > { %996 = vperm.xlu0 %2320, %v858_v0   ;;  %v891_v57 = vld [vmem:[%s2474_s9 + $0x198] sm:$0xff]  ;;  %v890_v58 = vld [vmem:[%s2474_s9 + $0x190] sm:$0xff]  ;;  %v893_v59 = vld [vmem:[%s2474_s9 + $0x1a8] sm:$0xff] }
  0x3f   : > { %2198 = vmatmul.mubr.msk.f32.gmra.mrb[18].mxu0 %vm262_vm0, %v213_v1  ;;  %v892_v60 = vld [vmem:[%s2474_s9 + $0x1a0] sm:$0xff]  ;;  %v895_v61 = vld [vmem:[%s2474_s9 + $0x1b8] sm:$0xff]  ;;  %v894_v62 = vld [vmem:[%s2474_s9 + $0x1b0] sm:$0xff] }
  0x40   : > { %2246 = vmatmul.mubr.msk.f32.gmra.mrb[18].mxu1 %vm262_vm0, %v245_v2  ;;  %2200 = vmatprep.mubr.msk.f32.mxu0 %vm262_vm0, %v214_v3  ;;  %v897_v63 = vld [vmem:[%s2474_s9 + $0x1c8] sm:$0xff]  ;;  %v896_v0 = vld [vmem:[%s2474_s9 + $0x1c0] sm:$0xff]  ;;  %v899_v1 = vld [vmem:[%s2474_s9 + $0x1d8] sm:$0xff] }
  0x41   : > { %2248 = vmatprep.mubr.msk.f32.mxu1 %vm262_vm0, %v246_v4  ;;  %1011 = vperm.xlu1 %2321, %v861_v5   ;;  %v898_v2 = vld [vmem:[%s2474_s9 + $0x1d0] sm:$0xff]  ;;  %v901_v3 = vld [vmem:[%s2474_s9 + $0x1e8] sm:$0xff]  ;;  %v900_v4 = vld [vmem:[%s2474_s9 + $0x1e0] sm:$0xff] }
  0x42   : > { %1006 = vperm.xlu0 %2320, %v860_v6   ;;  %v903_v5 = vld [vmem:[%s2474_s9 + $0x1f8] sm:$0xff]  ;;  %v902_v6 = vld [vmem:[%s2474_s9 + $0x1f0] sm:$0xff] }
  0x43   : > { %2201 = vmatmul.mubr.msk.f32.gmra.mrb[20].mxu0 %vm262_vm0, %v215_v7 }
  0x44   : > { %2249 = vmatmul.mubr.msk.f32.gmra.mrb[20].mxu1 %vm262_vm0, %v247_v8  ;;  %2203 = vmatprep.mubr.msk.f32.mxu0 %vm262_vm0, %v216_v9 }
  0x45   : > { %2251 = vmatprep.mubr.msk.f32.mxu1 %vm262_vm0, %v248_v10  ;;  %1021 = vperm.xlu1 %2321, %v863_v11  }
  0x46   : > { %1016 = vperm.xlu0 %2320, %v862_v12  }
  0x47   : > { %2204 = vmatmul.mubr.msk.f32.gmra.mrb[22].mxu0 %vm262_vm0, %v217_v13 }
  0x48   : > { %2252 = vmatmul.mubr.msk.f32.gmra.mrb[22].mxu1 %vm262_vm0, %v249_v14  ;;  %2206 = vmatprep.mubr.msk.f32.mxu0 %vm262_vm0, %v218_v15 }
  0x49   : > { %2254 = vmatprep.mubr.msk.f32.mxu1 %vm262_vm0, %v250_v16  ;;  %1031 = vperm.xlu1 %2321, %v865_v17  }
  0x4a   : > { %1026 = vperm.xlu0 %2320, %v864_v18  }
  0x4b   : > { %2207 = vmatmul.mubr.msk.f32.gmra.mrb[24].mxu0 %vm262_vm0, %v219_v19 }
  0x4c   : > { %2255 = vmatmul.mubr.msk.f32.gmra.mrb[24].mxu1 %vm262_vm0, %v251_v20  ;;  %2209 = vmatprep.mubr.msk.f32.mxu0 %vm262_vm0, %v220_v21 }
  0x4d   : > { %2257 = vmatprep.mubr.msk.f32.mxu1 %vm262_vm0, %v252_v22  ;;  %1041 = vperm.xlu1 %2321, %v867_v23  }
  0x4e   : > { %1036 = vperm.xlu0 %2320, %v866_v24  }
  0x4f   : > { %2210 = vmatmul.mubr.msk.f32.gmra.mrb[26].mxu0 %vm262_vm0, %v221_v25 }
  0x50   : > { %2258 = vmatmul.mubr.msk.f32.gmra.mrb[26].mxu1 %vm262_vm0, %v253_v26  ;;  %2212 = vmatprep.mubr.msk.f32.mxu0 %vm262_vm0, %v222_v27 }
  0x51   : > { %2260 = vmatprep.mubr.msk.f32.mxu1 %vm262_vm0, %v254_v28  ;;  %1051 = vperm.xlu1 %2321, %v869_v29  }
  0x52   : > { %1046 = vperm.xlu0 %2320, %v868_v30  }
  0x53   : > { %2213 = vmatmul.mubr.msk.f32.gmra.mrb[28].mxu0 %vm262_vm0, %v223_v31 }
  0x54   : > { %2261 = vmatmul.mubr.msk.f32.gmra.mrb[28].mxu1 %vm262_vm0, %v255_v32  ;;  %2215 = vmatprep.mubr.msk.f32.mxu0 %vm262_vm0, %v224_v33 }
  0x55   : > { %2263 = vmatprep.mubr.msk.f32.mxu1 %vm262_vm0, %v256_v34  ;;  %1061 = vperm.xlu1 %2321, %v871_v35  }
  0x56   : > { %1056 = vperm.xlu0 %2320, %v870_v36  }
  0x57   : > { %2216 = vmatmul.mubr.msk.f32.gmra.mrb[30].mxu0 %vm262_vm0, %v225_v37 }
  0x58   : > { %2264 = vmatmul.mubr.msk.f32.gmra.mrb[30].mxu1 %vm262_vm0, %v257_v38 }
  0x59   : > { %1071 = vperm.xlu1 %2321, %v873_v39  }
  0x5a   : > { %1066 = vperm.xlu0 %2320, %v872_v40  }
  0x5d   : > { %1081 = vperm.xlu1 %2321, %v875_v41  }
  0x5e   : > { %1076 = vperm.xlu0 %2320, %v874_v42  }
  0x61   : > { %1091 = vperm.xlu1 %2321, %v877_v43  }
  0x62   : > { %1086 = vperm.xlu0 %2320, %v876_v44  }
  0x65   : > { %1101 = vperm.xlu1 %2321, %v879_v45  }
  0x66   : > { %1096 = vperm.xlu0 %2320, %v878_v46  }
  0x69   : > { %1111 = vperm.xlu1 %2321, %v881_v47  }
  0x6a   : > { %1106 = vperm.xlu0 %2320, %v880_v48  }
  0x6d   : > { %1121 = vperm.xlu1 %2321, %v883_v49  }
  0x6e   : > { %1116 = vperm.xlu0 %2320, %v882_v50  }
  0x71   : > { %1131 = vperm.xlu1 %2321, %v885_v51  }
  0x72   : > { %1126 = vperm.xlu0 %2320, %v884_v52  }
  0x75   : > { %1141 = vperm.xlu1 %2321, %v887_v53  }
  0x76   : > { %1136 = vperm.xlu0 %2320, %v886_v54  }
  0x79   : > { %1151 = vperm.xlu1 %2321, %v889_v55  }
  0x7a   : > { %1146 = vperm.xlu0 %2320, %v888_v56  }
  0x7d   : > { %1161 = vperm.xlu1 %2321, %v891_v57  }
  0x7e   : > { %1156 = vperm.xlu0 %2320, %v890_v58  }
  0x81   : > { %1171 = vperm.xlu1 %2321, %v893_v59  }
  0x82   : > { %1166 = vperm.xlu0 %2320, %v892_v60  }
  0x85   : > { %1181 = vperm.xlu1 %2321, %v895_v61  }
  0x86   : > { %1176 = vperm.xlu0 %2320, %v894_v62  }
  0x89   : > { %1191 = vperm.xlu1 %2321, %v897_v63  }
  0x8a   : > { %1186 = vperm.xlu0 %2320, %v896_v0  }
  0x8d   : > { %1201 = vperm.xlu1 %2321, %v899_v1  }
  0x8e   : > { %1196 = vperm.xlu0 %2320, %v898_v2  }
  0x91   : > { %1211 = vperm.xlu1 %2321, %v901_v3  }
  0x92   : > { %1206 = vperm.xlu0 %2320, %v900_v4  }
  0x95   : > { %1221 = vperm.xlu1 %2321, %v903_v5  }
  0x96   : > { %1216 = vperm.xlu0 %2320, %v902_v6  }
  0x98   : > { %v2673_v7 = vpop.permute.xlu1 %916  ;;  %v907_v8 = vpop.permute.xlu0 %906 }
  0x9c   : > { %v922_v9 = vpop.permute.xlu1 %921 }
  0x9d   : > { %v912_v10 = vpop.permute.xlu0 %911 }
  0xa0   : > { %v2675_v11 = vpop.permute.xlu1 %931 }
  0xa1   : > { %v2677_v12 = vpop.permute.xlu0 %926 }
  0xa4   : > { %v2679_v13 = vpop.permute.xlu1 %941 }
  0xa5   : > { %v2681_v14 = vpop.permute.xlu0 %936 }
  0xa8   : > { %v2683_v15 = vpop.permute.xlu1 %951 }
  0xa9   : > { %v2685_v16 = vpop.permute.xlu0 %946 }
  0xac   : > { %v2687_v17 = vpop.permute.xlu1 %961 }
  0xad   : > { %v2689_v18 = vpop.permute.xlu0 %956 }
  0xb0   : > { %v2691_v19 = vpop.permute.xlu1 %971 }
  0xb1   : > { %v2693_v20 = vpop.permute.xlu0 %966 }
  0xb4   : > { %v2695_v21 = vpop.permute.xlu1 %981 }
  0xb5   : > { %v2697_v22 = vpop.permute.xlu0 %976 }
  0xb8   : > { %v2699_v23 = vpop.permute.xlu1 %991 }
  0xb9   : > { %v2701_v24 = vpop.permute.xlu0 %986 }
  0xbc   : > { %v2703_v25 = vpop.permute.xlu1 %1001 }
  0xbd   : > { %v2705_v26 = vpop.permute.xlu0 %996 }
  0xc0   : > { %v2707_v27 = vpop.permute.xlu1 %1011 }
  0xc1   : > { %v2709_v28 = vpop.permute.xlu0 %1006 }
  0xc4   : > { %v2711_v29 = vpop.permute.xlu1 %1021 }
  0xc5   : > { %v2713_v30 = vpop.permute.xlu0 %1016 }
  0xc8   : > { %v2715_v31 = vpop.permute.xlu1 %1031 }
  0xc9   : > { %v2717_v32 = vpop.permute.xlu0 %1026 }
  0xcc   : > { %v2719_v33 = vpop.permute.xlu1 %1041 }
  0xcd   : > { %v2721_v34 = vpop.permute.xlu0 %1036 }
  0xd0   : > { %v2723_v35 = vpop.permute.xlu1 %1051 }
  0xd1   : > { %v2725_v36 = vpop.permute.xlu0 %1046 }
  0xd4   : > { %v2727_v37 = vpop.permute.xlu1 %1061 }
  0xd5   : > { %v2729_v38 = vpop.permute.xlu0 %1056 }
  0xd8   : > { %v1072_v39 = vpop.permute.xlu1 %1071 }
  0xd9   : > { %v1067_v40 = vpop.permute.xlu0 %1066 }
  0xdc   : > { %v1082_v41 = vpop.permute.xlu1 %1081 }
  0xdd   : > { %v1077_v42 = vpop.permute.xlu0 %1076 }
  0xe0   : > { %v1092_v43 = vpop.permute.xlu1 %1091 }
  0xe1   : > { %v1087_v44 = vpop.permute.xlu0 %1086 }
  0xe4   : > { %v1102_v45 = vpop.permute.xlu1 %1101 }
  0xe5   : > { %v1097_v46 = vpop.permute.xlu0 %1096 }
  0xe8   : > { %v2731_v47 = vpop.permute.xlu1 %1111 }
  0xe9   : > { %v2733_v48 = vpop.permute.xlu0 %1106 }
  0xec   : > { %v2736_v49 = vpop.permute.xlu1 %1121 }
  0xed   : > { %v2738_v50 = vpop.permute.xlu0 %1116 }
  0xee   : > { %v2172_v51 = vpop.f32.mrb[0].mxu0 }
  0xef   : > { %v2220_v52 = vpop.f32.mrb[0].mxu1  ;;  %v1225_v53 = vmul.f32 %v2172_v51, %v912_v10  ;;  %v521_v55 = vpop.f32.mrb[1].mxu0 }
  0xf0   : > { %v1257_v54 = vmul.f32 %v2220_v52, %v1072_v39  ;;  %v681_v56 = vpop.f32.mrb[1].mxu1  ;;  %v2742_v57 = vpop.permute.xlu1 %1131  ;;  %v1224_v59 = vmul.f32 %v907_v8, %v521_v55 }
  0xf1   : > { %v2744_v58 = vpop.permute.xlu0 %1126  ;;  %v1256_v60 = vmul.f32 %v1067_v40, %v681_v56 }
  0xf2   : > { %v1906_v61 = vpack.c.bf16 %v1225_v53, %v1224_v59  ;;  %v2175_v63 = vpop.f32.mrb[2].mxu0 }
  0xf3   : > { %v1986_v62 = vpack.c.bf16 %v1257_v54, %v1256_v60  ;;  %v2223_v0 = vpop.f32.mrb[2].mxu1  ;;  %v1227_v1 = vmul.f32 %v2175_v63, %v922_v9  ;;  %v531_v3 = vpop.f32.mrb[3].mxu0 }
  0xf4   : > { %v1259_v2 = vmul.f32 %v2223_v0, %v1082_v41  ;;  %v691_v4 = vpop.f32.mrb[3].mxu1  ;;  %1907 = vst [vmem:[%s2746_s24] sm:$0xff] %v1906_v61   ;;  %v2750_v5 = vpop.permute.xlu1 %1141  ;;  %v1226_v8 = vmul.f32 %v2673_v7, %v531_v3 }
  0xf5   : > { %2078 = vst [vmem:[%s2746_s24 + $0x80] sm:$0xff] %v1986_v62   ;;  %v2752_v6 = vpop.permute.xlu0 %1136  ;;  %v1258_v10 = vmul.f32 %v1077_v42, %v691_v4 }
  0xf6   : > { %v1911_v39 = vpack.c.bf16 %v1227_v1, %v1226_v8  ;;  %v2178_v40 = vpop.f32.mrb[4].mxu0 }
  0xf7   : > { %v1991_v9 = vpack.c.bf16 %v1259_v2, %v1258_v10  ;;  %v2226_v41 = vpop.f32.mrb[4].mxu1  ;;  %v1229_v51 = vmul.f32 %v2178_v40, %v2675_v11  ;;  %v541_v53 = vpop.f32.mrb[5].mxu0 }
  0xf8   : > { %v1261_v52 = vmul.f32 %v2226_v41, %v1092_v43  ;;  %v701_v54 = vpop.f32.mrb[5].mxu1  ;;  %2063 = vst [vmem:[%s2746_s24 + $0x8] sm:$0xff] %v1911_v39   ;;  %v2758_v55 = vpop.permute.xlu1 %1151  ;;  %v1228_v7 = vmul.f32 %v2677_v12, %v541_v53 }
  0xf9   : > { %2079 = vst [vmem:[%s2746_s24 + $0x88] sm:$0xff] %v1991_v9   ;;  %v2760_v56 = vpop.permute.xlu0 %1146  ;;  %v1260_v42 = vmul.f32 %v1087_v44, %v701_v54 }
  0xfa   : > { %v1916_v59 = vpack.c.bf16 %v1229_v51, %v1228_v7  ;;  %v2181_v61 = vpop.f32.mrb[6].mxu0 }
  0xfb   : > { %v1996_v60 = vpack.c.bf16 %v1261_v52, %v1260_v42  ;;  %v2229_v62 = vpop.f32.mrb[6].mxu1  ;;  %v1231_v11 = vmul.f32 %v2181_v61, %v2679_v13  ;;  %v551_v63 = vpop.f32.mrb[7].mxu0 }
  0xfc   : > { %v1263_v43 = vmul.f32 %v2229_v62, %v1102_v45  ;;  %v711_v0 = vpop.f32.mrb[7].mxu1  ;;  %2064 = vst [vmem:[%s2746_s24 + $0x10] sm:$0xff] %v1916_v59   ;;  %v2766_v1 = vpop.permute.xlu1 %1161  ;;  %v1230_v12 = vmul.f32 %v2681_v14, %v551_v63 }
  0xfd   : > { %2080 = vst [vmem:[%s2746_s24 + $0x90] sm:$0xff] %v1996_v60   ;;  %v2768_v2 = vpop.permute.xlu0 %1156  ;;  %v1262_v44 = vmul.f32 %v1097_v46, %v711_v0 }
  0xfe   : > { %v1921_v3 = vpack.c.bf16 %v1231_v11, %v1230_v12  ;;  %v2184_v8 = vpop.f32.mrb[8].mxu0 }
  0xff   : > { %v2001_v4 = vpack.c.bf16 %v1263_v43, %v1262_v44  ;;  %v2232_v10 = vpop.f32.mrb[8].mxu1  ;;  %v1233_v13 = vmul.f32 %v2184_v8, %v2683_v15  ;;  %v561_v39 = vpop.f32.mrb[9].mxu0 }
 0x100   : > { %v1265_v45 = vmul.f32 %v2232_v10, %v2731_v47  ;;  %v721_v9 = vpop.f32.mrb[9].mxu1  ;;  %2065 = vst [vmem:[%s2746_s24 + $0x18] sm:$0xff] %v1921_v3   ;;  %v1232_v40 = vmul.f32 %v2685_v16, %v561_v39  ;;  %v2777_v14 = vpop.permute.xlu1 %1171 }
 0x101   : > { %2081 = vst [vmem:[%s2746_s24 + $0x98] sm:$0xff] %v2001_v4   ;;  %v1264_v41 = vmul.f32 %v2733_v48, %v721_v9  ;;  %v2779_v46 = vpop.permute.xlu0 %1166 }
 0x102   : > { %v1926_v51 = vpack.c.bf16 %v1233_v13, %v1232_v40  ;;  %v2187_v53 = vpop.f32.mrb[10].mxu0 }
 0x103   : > { %v2006_v52 = vpack.c.bf16 %v1265_v45, %v1264_v41  ;;  %v2235_v15 = vpop.f32.mrb[10].mxu1  ;;  %v1235_v47 = vmul.f32 %v2187_v53, %v2687_v17  ;;  %v571_v7 = vpop.f32.mrb[11].mxu0 }
 0x104   : > { %v1267_v54 = vmul.f32 %v2235_v15, %v2736_v49  ;;  %v731_v42 = vpop.f32.mrb[11].mxu1  ;;  %2066 = vst [vmem:[%s2746_s24 + $0x20] sm:$0xff] %v1926_v51   ;;  %v1234_v16 = vmul.f32 %v2689_v18, %v571_v7  ;;  %v1182_v0 = vpop.permute.xlu1 %1181 }
 0x105   : > { %2082 = vst [vmem:[%s2746_s24 + $0xa0] sm:$0xff] %v2006_v52   ;;  %v1266_v48 = vmul.f32 %v2738_v50, %v731_v42  ;;  %v2793_v50 = vpop.permute.xlu0 %1176 }
 0x106   : > { %v1931_v59 = vpack.c.bf16 %v1235_v47, %v1234_v16  ;;  %v2190_v61 = vpop.f32.mrb[12].mxu0 }
 0x107   : > { %v2011_v60 = vpack.c.bf16 %v1267_v54, %v1266_v48  ;;  %v2238_v62 = vpop.f32.mrb[12].mxu1  ;;  %v1237_v11 = vmul.f32 %v2190_v61, %v2691_v19  ;;  %v581_v43 = vpop.f32.mrb[13].mxu0 }
 0x108   : > { %v1269_v17 = vmul.f32 %v2238_v62, %v2742_v57  ;;  %v741_v49 = vpop.f32.mrb[13].mxu1  ;;  %2067 = vst [vmem:[%s2746_s24 + $0x28] sm:$0xff] %v1931_v59   ;;  %v1236_v63 = vmul.f32 %v2693_v20, %v581_v43  ;;  %v1192_v52 = vpop.permute.xlu1 %1191 }
 0x109   : > { %2083 = vst [vmem:[%s2746_s24 + $0xa8] sm:$0xff] %v2011_v60   ;;  %v1268_v18 = vmul.f32 %v2744_v58, %v741_v49 }
 0x10a   : > { %v1936_v12 = vpack.c.bf16 %v1237_v11, %v1236_v63  ;;  %v2193_v3 = vpop.f32.mrb[14].mxu0 }
 0x10b   : > { %v2016_v44 = vpack.c.bf16 %v1269_v17, %v1268_v18  ;;  %v2241_v4 = vpop.f32.mrb[14].mxu1  ;;  %v1239_v19 = vmul.f32 %v2193_v3, %v2695_v21  ;;  %v591_v8 = vpop.f32.mrb[15].mxu0 }
 0x10c   : > { %v1271_v57 = vmul.f32 %v2241_v4, %v2750_v5  ;;  %v751_v10 = vpop.f32.mrb[15].mxu1  ;;  %2068 = vst [vmem:[%s2746_s24 + $0x30] sm:$0xff] %v1936_v12   ;;  %v1238_v20 = vmul.f32 %v2697_v22, %v591_v8  ;;  %v1202_v17 = vpop.permute.xlu1 %1201 }
 0x10d   : > { %2084 = vst [vmem:[%s2746_s24 + $0xb0] sm:$0xff] %v2016_v44   ;;  %v1270_v58 = vmul.f32 %v2752_v6, %v751_v10  ;;  %v1187_v6 = vpop.permute.xlu0 %1186 }
 0x10e   : > { %v1941_v13 = vpack.c.bf16 %v1239_v19, %v1238_v20  ;;  %v2196_v39 = vpop.f32.mrb[16].mxu0 }
 0x10f   : > { %v2021_v45 = vpack.c.bf16 %v1271_v57, %v1270_v58  ;;  %v2244_v9 = vpop.f32.mrb[16].mxu1  ;;  %v1241_v40 = vmul.f32 %v2196_v39, %v2699_v23  ;;  %v601_v41 = vpop.f32.mrb[17].mxu0 }
 0x110   : > { %v1273_v21 = vmul.f32 %v2244_v9, %v2758_v55  ;;  %v761_v5 = vpop.f32.mrb[17].mxu1  ;;  %2069 = vst [vmem:[%s2746_s24 + $0x38] sm:$0xff] %v1941_v13   ;;  %v1240_v51 = vmul.f32 %v2701_v24, %v601_v41  ;;  %v1212_v13 = vpop.permute.xlu1 %1211 }
 0x111   : > { %2085 = vst [vmem:[%s2746_s24 + $0xb8] sm:$0xff] %v2021_v45   ;;  %v1272_v22 = vmul.f32 %v2760_v56, %v761_v5 }
 0x112   : > { %v1946_v53 = vpack.c.bf16 %v1241_v40, %v1240_v51  ;;  %v2199_v47 = vpop.f32.mrb[18].mxu0 }
 0x113   : > { %v2026_v15 = vpack.c.bf16 %v1273_v21, %v1272_v22  ;;  %v2247_v54 = vpop.f32.mrb[18].mxu1  ;;  %v1243_v23 = vmul.f32 %v2199_v47, %v2703_v25  ;;  %v611_v7 = vpop.f32.mrb[19].mxu0 }
 0x114   : > { %v1275_v55 = vmul.f32 %v2247_v54, %v2766_v1  ;;  %v771_v42 = vpop.f32.mrb[19].mxu1  ;;  %2070 = vst [vmem:[%s2746_s24 + $0x40] sm:$0xff] %v1946_v53   ;;  %v1242_v24 = vmul.f32 %v2705_v26, %v611_v7 }
 0x115   : > { %2086 = vst [vmem:[%s2746_s24 + $0xc0] sm:$0xff] %v2026_v15   ;;  %v1274_v56 = vmul.f32 %v2768_v2, %v771_v42  ;;  %v1197_v2 = vpop.permute.xlu0 %1196 }
 0x116   : > { %v1951_v16 = vpack.c.bf16 %v1243_v23, %v1242_v24  ;;  %v2202_v59 = vpop.f32.mrb[20].mxu0 }
 0x117   : > { %v2031_v48 = vpack.c.bf16 %v1275_v55, %v1274_v56  ;;  %v2250_v60 = vpop.f32.mrb[20].mxu1  ;;  %v1245_v61 = vmul.f32 %v2202_v59, %v2707_v27  ;;  %v621_v62 = vpop.f32.mrb[21].mxu0 }
 0x118   : > { %v1277_v25 = vmul.f32 %v2250_v60, %v2777_v14  ;;  %v781_v1 = vpop.f32.mrb[21].mxu1  ;;  %2071 = vst [vmem:[%s2746_s24 + $0x48] sm:$0xff] %v1951_v16   ;;  %v1244_v11 = vmul.f32 %v2709_v28, %v621_v62 }
 0x119   : > { %2087 = vst [vmem:[%s2746_s24 + $0xc8] sm:$0xff] %v2031_v48   ;;  %v1276_v26 = vmul.f32 %v2779_v46, %v781_v1 }
 0x11a   : > { %v1956_v43 = vpack.c.bf16 %v1245_v61, %v1244_v11  ;;  %v2205_v63 = vpop.f32.mrb[22].mxu0 }
 0x11b   : > { %v2036_v49 = vpack.c.bf16 %v1277_v25, %v1276_v26  ;;  %v2253_v18 = vpop.f32.mrb[22].mxu1  ;;  %v1247_v27 = vmul.f32 %v2205_v63, %v2711_v29  ;;  %v631_v12 = vpop.f32.mrb[23].mxu0 }
 0x11c   : > { %v1279_v14 = vmul.f32 %v2253_v18, %v1182_v0  ;;  %v791_v44 = vpop.f32.mrb[23].mxu1  ;;  %2072 = vst [vmem:[%s2746_s24 + $0x50] sm:$0xff] %v1956_v43   ;;  %v1246_v3 = vmul.f32 %v2713_v30, %v631_v12  ;;  %v1207_v30 = vpop.permute.xlu0 %1206 }
 0x11d   : > { %2088 = vst [vmem:[%s2746_s24 + $0xd0] sm:$0xff] %v2036_v49   ;;  %v1278_v28 = vmul.f32 %v2793_v50, %v791_v44 }
 0x11e   : > { %v1961_v46 = vpack.c.bf16 %v1247_v27, %v1246_v3  ;;  %v2208_v19 = vpop.f32.mrb[24].mxu0 }
 0x11f   : > { %v2041_v4 = vpack.c.bf16 %v1279_v14, %v1278_v28  ;;  %v2256_v57 = vpop.f32.mrb[24].mxu1  ;;  %v1249_v8 = vmul.f32 %v2208_v19, %v2715_v31  ;;  %v641_v20 = vpop.f32.mrb[25].mxu0 }
 0x120   : > { %v1281_v10 = vmul.f32 %v2256_v57, %v1192_v52  ;;  %v801_v29 = vpop.f32.mrb[25].mxu1  ;;  %2073 = vst [vmem:[%s2746_s24 + $0x58] sm:$0xff] %v1961_v46   ;;  %v1248_v0 = vmul.f32 %v2717_v32, %v641_v20  ;;  %v1217_v55 = vpop.permute.xlu0 %1216 }
 0x121   : > { %2089 = vst [vmem:[%s2746_s24 + $0xd8] sm:$0xff] %v2041_v4   ;;  %v1280_v58 = vmul.f32 %v1187_v6, %v801_v29 }
 0x122   : > { %v1966_v45 = vpack.c.bf16 %v1249_v8, %v1248_v0  ;;  %v2211_v39 = vpop.f32.mrb[26].mxu0 }
 0x123   : > { %v2046_v50 = vpack.c.bf16 %v1281_v10, %v1280_v58  ;;  %v2259_v9 = vpop.f32.mrb[26].mxu1  ;;  %v1251_v40 = vmul.f32 %v2211_v39, %v2719_v33  ;;  %v651_v21 = vpop.f32.mrb[27].mxu0 }
 0x124   : > { %v1283_v31 = vmul.f32 %v2259_v9, %v1202_v17  ;;  %v811_v41 = vpop.f32.mrb[27].mxu1  ;;  %2074 = vst [vmem:[%s2746_s24 + $0x60] sm:$0xff] %v1966_v45   ;;  %v1250_v5 = vmul.f32 %v2721_v34, %v651_v21  ;;  %v1222_v34 = vpop.permute.xlu1 %1221 }
 0x125   : > { %2090 = vst [vmem:[%s2746_s24 + $0xe0] sm:$0xff] %v2046_v50   ;;  %v1282_v51 = vmul.f32 %v1197_v2, %v811_v41 }
 0x126   : > { %v1971_v32 = vpack.c.bf16 %v1251_v40, %v1250_v5  ;;  %v2214_v52 = vpop.f32.mrb[28].mxu0 }
 0x127   : > { %v2051_v22 = vpack.c.bf16 %v1283_v31, %v1282_v51  ;;  %v2262_v6 = vpop.f32.mrb[28].mxu1  ;;  %v1253_v53 = vmul.f32 %v2214_v52, %v2723_v35  ;;  %v661_v33 = vpop.f32.mrb[29].mxu0 }
 0x128   : > { %v1285_v15 = vmul.f32 %v2262_v6, %v1212_v13  ;;  %v821_v47 = vpop.f32.mrb[29].mxu1  ;;  %2075 = vst [vmem:[%s2746_s24 + $0x68] sm:$0xff] %v1971_v32   ;;  %v1252_v54 = vmul.f32 %v2725_v36, %v661_v33 }
 0x129   : > { %2091 = vst [vmem:[%s2746_s24 + $0xe8] sm:$0xff] %v2051_v22   ;;  %v1284_v23 = vmul.f32 %v1207_v30, %v821_v47 }
 0x12a   : > { %v1976_v7 = vpack.c.bf16 %v1253_v53, %v1252_v54  ;;  %v2217_v24 = vpop.f32.mrb[30].mxu0 }
 0x12b   : > { %v2056_v42 = vpack.c.bf16 %v1285_v15, %v1284_v23  ;;  %v2265_v56 = vpop.f32.mrb[30].mxu1  ;;  %v1255_v35 = vmul.f32 %v2217_v24, %v2727_v37  ;;  %v671_v48 = vpop.f32.mrb[31].mxu0 }
 0x12c   : > { %v1287_v16 = vmul.f32 %v2265_v56, %v1222_v34  ;;  %v831_v59 = vpop.f32.mrb[31].mxu1  ;;  %2076 = vst [vmem:[%s2746_s24 + $0x70] sm:$0xff] %v1976_v7   ;;  %v1254_v36 = vmul.f32 %v2729_v38, %v671_v48 }
 0x12d   : > { %2092 = vst [vmem:[%s2746_s24 + $0xf0] sm:$0xff] %v2056_v42   ;;  %v1286_v60 = vmul.f32 %v1217_v55, %v831_v59 }
 0x12e   : > { %v1981_v37 = vpack.c.bf16 %v1255_v35, %v1254_v36 }
 0x12f   : > { %v2061_v61 = vpack.c.bf16 %v1287_v16, %v1286_v60 }
 0x130   : > { %2077 = vst [vmem:[%s2746_s24 + $0x78] sm:$0xff] %v1981_v37  }
 0x131   : > { %2093 = vst [vmem:[%s2746_s24 + $0xf8] sm:$0xff] %v2061_v61  }
 0x132   : > { %2335 = shalt.err (!%p2332_p3)
}
 0x133   : > { %s2336_s7 = scalar_lea.hbm %s2845_s29, 4096  ;;  %s2340_s10 = scalar_lea.hbm %s2897_s3, 12288 }
 0x134   : > { %p2337_p4 = scmp.ne.s32.totalorder %s2845_s29, %s2336_s7  ;;  %p2341_p9 = scmp.lt.u32.totalorder %s2845_s29, %s2897_s3 }
 0x135   : > { %p2342_p10 = scmp.lt.u32.totalorder %s2340_s10, %s2336_s7  ;;  %p2344_p12 = scmp.lt.u32.totalorder %s2336_s7, %s2845_s29 }
 0x136   : > { %p2338_p7 = pnand %p2337_p4, %p2448_p5 }
 0x137   : > { %p2343_p11 = por %p2342_p10, %p2341_p9 }
 0x138   : > { %p2339_p8 = pneg %p2338_p7 }
 0x139   : > { %p2345_p13 = por %p2344_p12, %p2343_p11 }
 0x13b   : > { %p2346_p0 = pnand %p2345_p13, %p2339_p8 }
 0x13d   : > { %2349 = shalt.err (!%p2346_p0)
}
 0x13e   : > { %s2388_s19 = smov 64   ;;  %s2389_s20 = smov 4  }
 0x13f   : > { %2278 = dma.vmem_to_hbm [thread:$0]  (%p2448_p5), %s2847_s26, 4096, %s2845_s29, %s2853_s16, %s2388_s19, %s2388_s19, %s2389_s20  }
 0x140 PF: > { %p2284_p1 = scmp.ge.s32.totalorder %s2384_s15, 2  ;;  %s1637_s24 = sand.u32 1, %s2372_s12  }
 0x141   : > { %s1638_s25 = scalar_lea.sflag [#allocation3], %s1637_s24 }
 0x142   : > { %p2281_p2 = pnand %p2284_p1, %p2452_p6 }
 0x144   : > { %2367 = dma.done.wait (!%p2281_p2), %s1638_s25, 4096  }
 0x145   : > { %2369 = vsyncadd (!%p2281_p2), %s1638_s25, 4294963200  ;;  %p13_p3 = scmp.ge.s32.totalorder %s2435_s18, 5   ;;  %s2900_s12 = smov %s2376_s13 }
 0x146   : > { %s2901_s13 = smov %s2380_s14  ;;  %s2902_s14 = smov %s2446_s21 }
 0x147   : > { %s2903_s15 = smov %s2435_s18  ;;  %15 = sbr.rel (!%p13_p3) target bundleno = 3 (0x3), region = 70 }
 0x14e   :  { %1643 = vsyncpa [#allocation3], 1 }
 0x14f   :  { %1645 = vsyncpa [#allocation3 + $0x1], 1 }

</bundles_post_ra>
